<compile_context>
chip_gen: v6e
topology: v6e:2x2x1
jax: 0.10.0
libtpu: 0.0.40
codegen_flags: <defaults>
</compile_context>

<pallas_src>
import functools
import math

import jax
import jax.numpy as jnp
from jax.experimental import pallas as pl
from jax.experimental.pallas import tpu as pltpu

NEG_INF = -1e30  # finite "masked" fill keeps max()/exp() NaN-free in f32


def _round_up(x, m):
    return ((x + m - 1) // m) * m


def _pick_tile(dim, want, granule):
    """Largest tile <= want that divides dim and is a multiple of granule
    (falls back to the full dim)."""
    if dim <= want:
        return dim
    t = (want // granule) * granule
    while t >= granule:
        if dim % t == 0:
            return t
        t -= granule
    return dim


def _choose_seq_tile(qlen, klen, want=256):
    """Common q/k tile: largest divisor of gcd(qlen, klen) <= want, preferring
    multiples of 256/128 (MXU cadence), minimum granule 8."""
    g = math.gcd(qlen, klen)
    cap = min(g, want)
    for gran in (256, 128, 64, 32, 16, 8):
        t = (cap // gran) * gran
        while t >= gran:
            if g % t == 0:
                return t
            t -= gran
    raise ValueError(
        f"qlen={qlen}, klen={klen}: need a common tile that is a multiple of 8")


@functools.lru_cache(maxsize=1)
def _vmem_limit_bytes():
    phys = None
    try:
        info = pltpu.get_tpu_info()
        for name in ("vmem_capacity_bytes", "vmem_bytes"):
            phys = getattr(info, name, None)
            if phys:
                break
    except Exception:
        phys = None
    if not phys:
        return 48 * 1024 * 1024          # conservative: fits every generation
    # leave headroom for compiler scratch / double-buffering:
    # ~48 MiB on v7x (64 MiB physical), ~96 MiB on v5e/v6e (128 MiB physical)
    return int(min(phys * 3 // 4, 100 * 1024 * 1024))


def _mosaic_params(dimension_semantics):
    return pltpu.CompilerParams(dimension_semantics=dimension_semantics,
                                vmem_limit_bytes=_vmem_limit_bytes())


# -----------------------------------------------------------------------------
# Tiled matmul (f32/bf16 inputs cast to bf16 in-kernel, f32 accumulation)
# -----------------------------------------------------------------------------
def _matmul_kernel(x_ref, w_ref, o_ref, acc_ref):
    @pl.when(pl.program_id(2) == 0)
    def _():
        acc_ref[...] = jnp.zeros_like(acc_ref)

    acc_ref[...] += jnp.dot(x_ref[...].astype(jnp.bfloat16),
                            w_ref[...].astype(jnp.bfloat16),
                            preferred_element_type=jnp.float32)

    @pl.when(pl.program_id(2) == pl.num_programs(2) - 1)
    def _():
        o_ref[...] = acc_ref[...].astype(o_ref.dtype)


def pallas_matmul(x, w, out_dtype=jnp.float32, bm=512, bn=512, bk=1024):
    """x: (M, K) @ w: (K, N) -> (M, N); operands cast to bf16 inside the kernel."""
    M, K = x.shape
    K2, N = w.shape
    assert K == K2
    bm = _pick_tile(M, bm, 8)
    bn = _pick_tile(N, bn, 128)
    bk = _pick_tile(K, bk, 128)
    return pl.pallas_call(
        _matmul_kernel,
        out_shape=jax.ShapeDtypeStruct((M, N), out_dtype),
        grid=(M // bm, N // bn, K // bk),
        in_specs=[pl.BlockSpec((bm, bk), lambda i, j, k: (i, k)),
                  pl.BlockSpec((bk, bn), lambda i, j, k: (k, j))],
        out_specs=pl.BlockSpec((bm, bn), lambda i, j, k: (i, j)),
        scratch_shapes=[pltpu.VMEM((bm, bn), jnp.float32)],
        compiler_params=_mosaic_params(("parallel", "parallel", "arbitrary")),
    )(x, w)


# -----------------------------------------------------------------------------
# o-projection with residual add (+ optional LayerNorm) fused into the epilogue
# -----------------------------------------------------------------------------
def _oproj_kernel(x_ref, w_ref, res_ref, g_ref, b_ref, o_ref, acc_ref, *, do_ln):
    k = pl.program_id(1)

    @pl.when(k == 0)
    def _():
        acc_ref[...] = jnp.zeros_like(acc_ref)

    acc_ref[...] += jnp.dot(x_ref[...].astype(jnp.bfloat16),
                            w_ref[...].astype(jnp.bfloat16),
                            preferred_element_type=jnp.float32)

    @pl.when(k == pl.num_programs(1) - 1)
    def _():
        z = acc_ref[...] + res_ref[...]
        if do_ln:  # static
            mu = jnp.mean(z, axis=-1, keepdims=True)
            var = jnp.mean(jnp.square(z - mu), axis=-1, keepdims=True)
            z = (z - mu) * jax.lax.rsqrt(var + 1e-5) * g_ref[...] + b_ref[...]
        o_ref[...] = z.astype(o_ref.dtype)


def pallas_oproj_residual(x, w, res, gamma, beta, *, do_ln, bm=512, bk=1024):
    """(x @ w) + res, optionally LayerNorm'd row-wise (N is kept whole per tile)."""
    M, K = x.shape
    K2, N = w.shape
    assert K == K2 and res.shape == (M, N)
    bm = _pick_tile(M, bm, 8)
    bk = _pick_tile(K, bk, 128)
    kern = functools.partial(_oproj_kernel, do_ln=do_ln)
    return pl.pallas_call(
        kern,
        out_shape=jax.ShapeDtypeStruct((M, N), jnp.float32),
        grid=(M // bm, K // bk),
        in_specs=[pl.BlockSpec((bm, bk), lambda i, k: (i, k)),
                  pl.BlockSpec((bk, N), lambda i, k: (k, 0)),
                  pl.BlockSpec((bm, N), lambda i, k: (i, 0)),
                  pl.BlockSpec((1, N), lambda i, k: (0, 0)),
                  pl.BlockSpec((1, N), lambda i, k: (0, 0))],
        out_specs=pl.BlockSpec((bm, N), lambda i, k: (i, 0)),
        scratch_shapes=[pltpu.VMEM((bm, N), jnp.float32)],
        compiler_params=_mosaic_params(("parallel", "arbitrary")),
    )(x, w, res, gamma, beta)


# -----------------------------------------------------------------------------
# Row-tiled LayerNorm (used only for pre_lnorm's input normalization)
# -----------------------------------------------------------------------------
def _ln_kernel(x_ref, g_ref, b_ref, o_ref):
    x = x_ref[...]
    mu = jnp.mean(x, axis=-1, keepdims=True)
    var = jnp.mean(jnp.square(x - mu), axis=-1, keepdims=True)
    o_ref[...] = (x - mu) * jax.lax.rsqrt(var + 1e-5) * g_ref[...] + b_ref[...]


def pallas_layernorm(x, gamma, beta):
    rows, d_model = x.shape
    br = _pick_tile(rows, 512, 8)
    row_spec = pl.BlockSpec((br, d_model), lambda i: (i, 0))
    gb_spec = pl.BlockSpec((1, d_model), lambda i: (0, 0))
    return pl.pallas_call(
        _ln_kernel,
        out_shape=jax.ShapeDtypeStruct((rows, d_model), jnp.float32),
        grid=(rows // br,),
        in_specs=[row_spec, gb_spec, gb_spec],
        out_specs=row_spec,
        compiler_params=_mosaic_params(("parallel",)),
    )(x, gamma, beta)


# -----------------------------------------------------------------------------
# Flash-style relative multi-head attention kernel
#   grid = (batch, head_group, q_tile, k_tile)   [last axis is the reduction]
# -----------------------------------------------------------------------------
def _rel_attn_kernel(q_ref, k_ref, v_ref, rlo_ref, rhi_ref, rwb_ref, rrb_ref,
                     o_ref, acc_ref, m_ref, l_ref,
                     *, scale, mlen, t_seq, d_head, n_grp, w_pad):
    T, D, G = t_seq, d_head, n_grp
    qt = pl.program_id(2)
    kt = pl.program_id(3)

    @pl.when(kt == 0)
    def _():
        m_ref[...] = jnp.full_like(m_ref, NEG_INF)
        l_ref[...] = jnp.zeros_like(l_ref)
        acc_ref[...] = jnp.zeros_like(acc_ref)

    # Skip K tiles entirely in the causal-masked future of this Q tile.
    @pl.when(kt * T <= qt * T + (T - 1) + mlen)
    def _compute():
        # causal (+memory) mask for this (Q tile, K tile), built from iota
        row = jax.lax.broadcasted_iota(jnp.int32, (T, T), 0) + qt * T
        col = jax.lax.broadcasted_iota(jnp.int32, (T, T), 1) + kt * T
        keep = col <= row + mlen

        q_blk = q_ref[0, 0]      # (T, G*D) bf16
        k_blk = k_ref[0, 0]      # (T, G*D) bf16
        v_blk = v_ref[0, 0]      # (T, G*D) bf16
        rlo = rlo_ref[0]         # (T, G*D) bf16  (padded-R rows [s*T, (s+1)*T))
        rhi = rhi_ref[0]         # (T, G*D) bf16  (padded-R rows [(s+1)*T, (s+2)*T))

        for g in range(G):       # small static head-group loop (G in {1, 2})
            sl = slice(g * D, (g + 1) * D)
            qg = q_blk[:, sl].astype(jnp.float32)
            qw = (qg + rwb_ref[0, 0, sl]).astype(jnp.bfloat16)   # content query
            qr = (qg + rrb_ref[0, 0, sl]).astype(jnp.bfloat16)   # position query
            kg = k_blk[:, sl]
            vg = v_blk[:, sl]

            # content term AC[i, j] = (q_i + r_w_bias) . k_j
            ac = jax.lax.dot_general(qw, kg, (((1,), (1,)), ((), ())),
                                     preferred_element_type=jnp.float32)  # (T, T)

            # position term: matmul against the 2T-row R window, then ONE per-row
            # lane rotation (XLU) == Transformer-XL rel_shift for this tile.
            rwin = jnp.concatenate([rlo[:, sl], rhi[:, sl]], axis=0)       # (2T, D)
            if w_pad > 2 * T:    # pad lanes of the result to a 128 multiple
                rwin = jnp.concatenate(
                    [rwin, jnp.zeros((w_pad - 2 * T, D), rwin.dtype)], axis=0)
            bd_w = jax.lax.dot_general(qr, rwin, (((1,), (1,)), ((), ())),
                                       preferred_element_type=jnp.float32)  # (T, Wp)
            bd = pltpu.roll(bd_w, w_pad - T, 1, stride=1, stride_axis=0)[:, :T]

            s = (ac + bd) * scale
            s = jnp.where(keep, s, NEG_INF)

            # online softmax update (flash-attention pattern), state per head g
            m_prev = m_ref[:, g:g + 1]
            l_prev = l_ref[:, g:g + 1]
            a_prev = acc_ref[:, sl]

            m_new = jnp.maximum(m_prev, jnp.max(s, axis=-1, keepdims=True))
            alpha = jnp.exp(m_prev - m_new)
            p = jnp.exp(s - m_new)
            l_new = alpha * l_prev + jnp.sum(p, axis=-1, keepdims=True)
            a_new = alpha * a_prev + jax.lax.dot_general(
                p.astype(vg.dtype), vg, (((1,), (0,)), ((), ())),
                preferred_element_type=jnp.float32)

            m_ref[:, g:g + 1] = m_new
            l_ref[:, g:g + 1] = l_new
            acc_ref[:, sl] = a_new

    @pl.when(kt == pl.num_programs(3) - 1)
    def _finalize():
        outs = []
        for g in range(G):
            inv = pl.reciprocal(l_ref[:, g:g + 1], approx=True)
            outs.append(acc_ref[:, g * D:(g + 1) * D] * inv)
        o = outs[0] if G == 1 else jnp.concatenate(outs, axis=-1)
        o_ref[0, 0] = o.astype(o_ref.dtype)   # one lane-dense (T, G*D) store


def pallas_rel_attention(q, k, v, rp, rwb, rrb, *, scale, mlen, t_seq, d_head,
                         n_grp):
    """q: (B, HP, Q, G*D) bf16; k/v: (B, HP, K, G*D) bf16;
    rp: (HP, KPAD, G*D) bf16 zero-padded R; rwb/rrb: (HP, 1, G*D) f32."""
    B, HP, Q, GD = q.shape
    K = k.shape[2]
    T = t_seq
    n_qt, n_kt = Q // T, K // T
    w_pad = _round_up(2 * T, 128)

    kern = functools.partial(_rel_attn_kernel, scale=scale, mlen=mlen,
                             t_seq=T, d_head=d_head, n_grp=n_grp, w_pad=w_pad)
    return pl.pallas_call(
        kern,
        out_shape=jax.ShapeDtypeStruct((B, HP, Q, GD), jnp.bfloat16),
        grid=(B, HP, n_qt, n_kt),
        in_specs=[
            pl.BlockSpec((1, 1, T, GD), lambda b, h, i, j: (b, h, i, 0)),   # q
            pl.BlockSpec((1, 1, T, GD), lambda b, h, i, j: (b, h, j, 0)),   # k
            pl.BlockSpec((1, 1, T, GD), lambda b, h, i, j: (b, h, j, 0)),   # v
            pl.BlockSpec((1, T, GD),                                        # R lo
                         lambda b, h, i, j: (h, j + n_qt - 1 - i, 0)),
            pl.BlockSpec((1, T, GD),                                        # R hi
                         lambda b, h, i, j: (h, j + n_qt - i, 0)),
            pl.BlockSpec((1, 1, GD), lambda b, h, i, j: (h, 0, 0)),         # r_w_bias
            pl.BlockSpec((1, 1, GD), lambda b, h, i, j: (h, 0, 0)),         # r_r_bias
        ],
        out_specs=pl.BlockSpec((1, 1, T, GD), lambda b, h, i, j: (b, h, i, 0)),
        scratch_shapes=[
            pltpu.VMEM((T, GD), jnp.float32),      # acc (lane-dense head group)
            pltpu.VMEM((T, n_grp), jnp.float32),   # running max per head
            pltpu.VMEM((T, n_grp), jnp.float32),   # running sum per head
        ],
        compiler_params=_mosaic_params(
            ("parallel", "parallel", "parallel", "arbitrary")),
    )(q, k, v, rp, rp, rwb, rrb)


# -----------------------------------------------------------------------------
# Forward pass (glue in JAX, hot path in Pallas)
# -----------------------------------------------------------------------------
def rel_multihead_attn_forward(w, r, params, mems=None, *, n_head, d_head,
                               pre_lnorm=False, seq_tile=256):
    qlen, bsz, d_model = w.shape
    H, D = n_head, d_head
    HD = H * D
    scale = 1.0 / (d_head ** 0.5)

    cat = jnp.concatenate([mems, w], axis=0) if mems is not None else w
    klen = cat.shape[0]
    mlen = klen - qlen
    assert r.shape[0] == klen, "rlen must equal klen (Transformer-XL convention)"

    gamma = params['ln_gamma'].reshape(1, d_model)
    beta = params['ln_beta'].reshape(1, d_model)

    cat_flat = cat.reshape(klen * bsz, d_model)
    qkv_in = pallas_layernorm(cat_flat, gamma, beta) if pre_lnorm else cat_flat
    q_in = qkv_in[mlen * bsz:]                       # last qlen rows (contiguous)

    w_q = params['w_qkv'][:HD]
    w_kv = params['w_qkv'][HD:]                      # fused K+V projection weight

    # projections; f32 tiles are cast to bf16 inside the matmul kernel
    q_heads = pallas_matmul(q_in, w_q.T, out_dtype=jnp.bfloat16)        # (Q*B, HD)
    kv_heads = pallas_matmul(qkv_in, w_kv.T, out_dtype=jnp.bfloat16)    # (K*B, 2HD)
    r_heads = pallas_matmul(r, params['w_r'].T, out_dtype=jnp.bfloat16)  # (K, HD)

    # group heads so the kernel's minor dim is lane-dense (G*D == 128 if possible)
    G = 1
    if D < 128 and 128 % D == 0 and H % (128 // D) == 0:
        G = 128 // D
    HP = H // G
    GD = G * D

    T = _choose_seq_tile(qlen, klen, want=seq_tile)
    n_qt, n_kt = qlen // T, klen // T

    def to_bhsd(x, rows):        # (rows*B, HD) -> (B, HP, rows, G*D)
        return jnp.transpose(x.reshape(rows, bsz, HP, GD), (1, 2, 0, 3))

    q4 = to_bhsd(q_heads, qlen)
    k4 = to_bhsd(kv_heads[:, :HD], klen)
    v4 = to_bhsd(kv_heads[:, HD:], klen)

    # zero-padded, head-grouped R: rp[h, m] = r_proj[m-1, h] for 1 <= m <= klen,
    # zeros otherwise (front pad drives the rel-shift; the tail pad / "garbage"
    # region is covered by the causal mask).
    kpad = (n_qt + n_kt) * T                         # == qlen + klen
    r3 = r_heads.reshape(klen, HP, GD)
    rp = jnp.concatenate([
        jnp.zeros((1, HP, GD), r3.dtype), r3,
        jnp.zeros((kpad - 1 - klen, HP, GD), r3.dtype)], axis=0)
    rp = jnp.transpose(rp, (1, 0, 2))                # (HP, KPAD, G*D)

    rwb = params['r_w_bias'].astype(jnp.float32).reshape(HP, 1, GD)
    rrb = params['r_r_bias'].astype(jnp.float32).reshape(HP, 1, GD)

    attn = pallas_rel_attention(q4, k4, v4, rp, rwb, rrb, scale=scale, mlen=mlen,
                                t_seq=T, d_head=D, n_grp=G)   # (B, HP, Q, G*D) bf16

    attn_vec = jnp.transpose(attn, (2, 0, 1, 3)).reshape(qlen * bsz, HD)
    w_flat = w.reshape(qlen * bsz, d_model)

    # o-projection with residual add (+ post-LN when not pre_lnorm) fused in
    out = pallas_oproj_residual(attn_vec, params['w_o'].T, w_flat, gamma, beta,
                                do_ln=not pre_lnorm)
    return out.reshape(qlen, bsz, d_model)


# -----------------------------------------------------------------------------
# Pure-JAX reference (mirrors the PyTorch forward, incl. exact _rel_shift trick).
# Matmul operands are rounded to bf16 to match the kernel's MXU quantization.
# -----------------------------------------------------------------------------
def _ref_rel_shift(x):
    Qd, Kd, B, H = x.shape
    zero_pad = jnp.zeros((Qd, 1, B, H), x.dtype)
    xp = jnp.concatenate([zero_pad, x], axis=1)
    xp = xp.reshape(Kd + 1, Qd, B, H)
    return xp[1:].reshape(Qd, Kd, B, H)


def ref_forward(w, r, params, mems, *, n_head, d_head, pre_lnorm=False):
    bq = lambda x: x.astype(jnp.bfloat16).astype(jnp.float32)
    qlen, bsz, d_model = w.shape
    H, D = n_head, d_head
    scale = 1.0 / (d_head ** 0.5)

    cat = jnp.concatenate([mems, w], axis=0) if mems is not None else w
    klen = cat.shape[0]
    mlen = klen - qlen

    def layer_norm(x):
        mu = jnp.mean(x, axis=-1, keepdims=True)
        var = jnp.mean(jnp.square(x - mu), axis=-1, keepdims=True)
        return ((x - mu) * jax.lax.rsqrt(var + 1e-5) * params['ln_gamma']
                + params['ln_beta'])

    qkv_in = layer_norm(cat) if pre_lnorm else cat
    w_q = params['w_qkv'][:H * D]
    w_k = params['w_qkv'][H * D:2 * H * D]
    w_v = params['w_qkv'][2 * H * D:]

    q_h = (bq(qkv_in[mlen:]) @ bq(w_q.T)).reshape(qlen, bsz, H, D)
    k_h = (bq(qkv_in) @ bq(w_k.T)).reshape(klen, bsz, H, D)
    v_h = (bq(qkv_in) @ bq(w_v.T)).reshape(klen, bsz, H, D)
    r_k = (bq(r) @ bq(params['w_r'].T)).reshape(klen, H, D)

    AC = jnp.einsum('ibnd,jbnd->ijbn',
                    bq(q_h + params['r_w_bias'][None, None]), bq(k_h))
    BD = jnp.einsum('ibnd,jnd->ijbn',
                    bq(q_h + params['r_r_bias'][None, None]), bq(r_k))
    BD = _ref_rel_shift(BD)

    score = (AC + BD) * scale
    mask = jnp.triu(jnp.ones((qlen, klen), bool), k=1 + mlen)
    score = jnp.where(mask[:, :, None, None], NEG_INF, score)
    prob = jax.nn.softmax(score, axis=1)

    vec = jnp.einsum('ijbn,jbnd->ibnd', bq(prob), bq(v_h)).reshape(qlen, bsz, H * D)
    attn_out = bq(vec) @ bq(params['w_o'].T)
    if pre_lnorm:
        return w + attn_out
    return layer_norm(w + attn_out)


# -----------------------------------------------------------------------------
# Demo
# -----------------------------------------------------------------------------
if __name__ == "__main__":
    n_head, d_model, d_head = 2, 128, 64

    key = jax.random.PRNGKey(0)
    ks = jax.random.split(key, 5)
    params = {
        'w_qkv': 0.02 * jax.random.normal(ks[0], (3 * n_head * d_head, d_model), jnp.float32),
        'w_r':   0.02 * jax.random.normal(ks[1], (n_head * d_head, d_model), jnp.float32),
        'w_o':   0.02 * jax.random.normal(ks[2], (d_model, n_head * d_head), jnp.float32),
        'r_w_bias': 0.02 * jax.random.normal(ks[3], (n_head, d_head), jnp.float32),
        'r_r_bias': 0.02 * jax.random.normal(ks[4], (n_head, d_head), jnp.float32),
        'ln_gamma': jnp.ones((d_model,), jnp.float32),
        'ln_beta':  jnp.zeros((d_model,), jnp.float32),
    }

    configs = [
        dict(qlen=32, mlen=32, bsz=2),   # multi q- and k-tiles + memory
        dict(qlen=32, mlen=0, bsz=1),    # no memory (mlen == 0)
    ]
    for cfg in configs:
        qlen, mlen, bsz = cfg['qlen'], cfg['mlen'], cfg['bsz']
        klen = qlen + mlen
        dk = jax.random.split(jax.random.fold_in(key, 1000 * qlen + mlen), 3)
        w = jax.random.normal(dk[0], (qlen, bsz, d_model), jnp.float32)
        mems = (jax.random.normal(dk[1], (mlen, bsz, d_model), jnp.float32)
                if mlen > 0 else None)
        r = jax.random.normal(dk[2], (klen, d_model), jnp.float32)

        for pre_lnorm in (False, True):
            out = rel_multihead_attn_forward(
                w, r, params, mems=mems, n_head=n_head, d_head=d_head,
                pre_lnorm=pre_lnorm, seq_tile=16)   # small tiles -> multi-tile grid
            out = jax.block_until_ready(out)
            ref = ref_forward(w, r, params, mems, n_head=n_head, d_head=d_head,
                              pre_lnorm=pre_lnorm)
            assert out.shape == (qlen, bsz, d_model)
            err = float(jnp.max(jnp.abs(out - ref)))
            assert err < 2.5e-2, f"{cfg} pre_lnorm={pre_lnorm}: max abs diff {err}"

    print("KERNEL_OK")
</pallas_src>

<mosaic_0001>
module attributes {stable_mosaic.version = 11 : i64} {
  func.func @_matmul_kernel(%arg0: i32, %arg1: i32, %arg2: i32, %arg3: memref<64x128xf32, #tpu.memory_space<vmem>>, %arg4: memref<128x128xf32, #tpu.memory_space<vmem>>, %arg5: memref<64x128xbf16, #tpu.memory_space<vmem>>, %arg6: memref<64x128xf32, #tpu.memory_space<vmem>>) attributes {dimension_semantics = [#tpu.dimension_semantics<parallel>, #tpu.dimension_semantics<parallel>, #tpu.dimension_semantics<arbitrary>], iteration_bounds = array<i64: 1, 1, 1>, scalar_prefetch = 0 : i64, scratch_operands = 1 : i64, tpu.core_type = #tpu.core_type<tc>, window_params = [{transform_indices = @transform_0, window_bounds = array<i64: 64, 128>}, {transform_indices = @transform_1, window_bounds = array<i64: 128, 128>}, {transform_indices = @transform_2, window_bounds = array<i64: 64, 128>}]} {
    %c0_i32 = arith.constant 0 : i32
    %0 = arith.cmpi eq, %arg2, %c0_i32 : i32
    %1 = arith.extui %0 : i1 to i32
    %c0_i32_0 = arith.constant 0 : i32
    %2 = arith.cmpi ne, %1, %c0_i32_0 : i32
    scf.if %2 {
      %cst_10 = arith.constant 0.000000e+00 : f32
      %14 = vector.broadcast %cst_10 : f32 to vector<64x128xf32>
      %c0_11 = arith.constant 0 : index
      %c0_12 = arith.constant 0 : index
      %15 = vector.load %arg6[%c0_11, %c0_12] : memref<64x128xf32, #tpu.memory_space<vmem>>, vector<64x128xf32>
      tpu.vector_store %arg6[%c0_11, %c0_12], %14 {strides = array<i32>} : memref<64x128xf32, #tpu.memory_space<vmem>>, vector<64x128xf32>,
    } else {
    }
    %c0 = arith.constant 0 : index
    %c0_1 = arith.constant 0 : index
    %3 = vector.load %arg6[%c0, %c0_1] : memref<64x128xf32, #tpu.memory_space<vmem>>, vector<64x128xf32>
    %c0_2 = arith.constant 0 : index
    %c0_3 = arith.constant 0 : index
    %4 = vector.load %arg3[%c0_2, %c0_3] : memref<64x128xf32, #tpu.memory_space<vmem>>, vector<64x128xf32>
    %5 = arith.truncf %4 : vector<64x128xf32> to vector<64x128xbf16>
    %c0_4 = arith.constant 0 : index
    %c0_5 = arith.constant 0 : index
    %6 = vector.load %arg4[%c0_4, %c0_5] : memref<128x128xf32, #tpu.memory_space<vmem>>, vector<128x128xf32>
    %7 = arith.truncf %6 : vector<128x128xf32> to vector<128x128xbf16>
    %cst = arith.constant dense<0.000000e+00> : vector<64x128xf32>
    %8 = tpu.matmul %5, %7, %cst {dimension_numbers = #tpu.dot_dimension_numbers<[1], [0], [0], [1], [0, 0, 1, 1], [], []>} : vector<64x128xbf16>, vector<128x128xbf16>, vector<64x128xf32> -> vector<64x128xf32>
    %9 = arith.addf %3, %8 : vector<64x128xf32>
    %c0_6 = arith.constant 0 : index
    %c0_7 = arith.constant 0 : index
    %10 = vector.load %arg6[%c0_6, %c0_7] : memref<64x128xf32, #tpu.memory_space<vmem>>, vector<64x128xf32>
    tpu.vector_store %arg6[%c0_6, %c0_7], %9 {strides = array<i32>} : memref<64x128xf32, #tpu.memory_space<vmem>>, vector<64x128xf32>,
    %c0_i32_8 = arith.constant 0 : i32
    %11 = arith.cmpi eq, %arg2, %c0_i32_8 : i32
    %12 = arith.extui %11 : i1 to i32
    %c0_i32_9 = arith.constant 0 : i32
    %13 = arith.cmpi ne, %12, %c0_i32_9 : i32
    scf.if %13 {
      %c0_10 = arith.constant 0 : index
      %c0_11 = arith.constant 0 : index
      %14 = vector.load %arg6[%c0_10, %c0_11] : memref<64x128xf32, #tpu.memory_space<vmem>>, vector<64x128xf32>
      %15 = arith.truncf %14 : vector<64x128xf32> to vector<64x128xbf16>
      %c0_12 = arith.constant 0 : index
      %c0_13 = arith.constant 0 : index
      %16 = vector.load %arg5[%c0_12, %c0_13] : memref<64x128xbf16, #tpu.memory_space<vmem>>, vector<64x128xbf16>
      tpu.vector_store %arg5[%c0_12, %c0_13], %15 {strides = array<i32>} : memref<64x128xbf16, #tpu.memory_space<vmem>>, vector<64x128xbf16>,
    } else {
    }
    return
  }
  func.func @transform_0(%arg0: i32, %arg1: i32, %arg2: i32) -> (i32, i32) {
    %c0_i32 = arith.constant 0 : i32
    return %arg0, %arg2 : i32, i32
  }
  func.func @transform_1(%arg0: i32, %arg1: i32, %arg2: i32) -> (i32, i32) {
    %c0_i32 = arith.constant 0 : i32
    return %arg2, %arg1 : i32, i32
  }
  func.func @transform_2(%arg0: i32, %arg1: i32, %arg2: i32) -> (i32, i32) {
    %c0_i32 = arith.constant 0 : i32
    return %arg0, %arg1 : i32, i32
  }
}

</mosaic_0001>

<bundles_post_ra>
// kernel: tpu_custom_call.1
= control target key start
LH: loop header
LB: loop body
LE: loop exit
PB: predicated region body
PF: predicated region fallthrough
CT: control target
= control target key end

     0   :  { %7 = vsyncpa [#allocation4], 0  ;;  %s442_s0 = inlined_call_operand.hbm [shape: f32[64,128], index: 0, kind: input, shape index: {}]   ;;  %s443_s1 = inlined_call_operand.hbm [shape: f32[128,128], index: 1, kind: input, shape index: {}]   ;;  %s444_s2 = inlined_call_operand.hbm [shape: bf16[64,128], index: 2, kind: output, shape index: {}]  }
   0x1   :  { %8 = vsyncpa [#allocation7], 0 }
   0x2   :  { %9 = vsyncpa [#allocation5], 0  ;;  %s411_s9 = smov [#allocation3]  }
   0x3   :  { %s15_s10 = sshll.u32 %s411_s9, 4  ;;  %s16_s10 = int_to_ptr.vmem [resolvable:$true] %s15_s10 }
   0x4   :  { %s353_s11 = scalar_lea.vmem %s16_s10, 1024  ;;  %p358_p1 = scmp.lt.s32.totalorder %s16_s10, %s16_s10 }
   0x5   :  { %p354_p0 = scmp.ne.s32.totalorder %s16_s10, %s353_s11  ;;  %p359_p2 = scmp.lt.s32.totalorder %s353_s11, %s353_s11 }
   0x7   :  { %p360_p3 = por %p359_p2, %p358_p1 }
   0x9   :  { %p361_p4 = pnand %p360_p3, %p354_p0 }
   0xb   :  { %364 = shalt.err (!%p361_p4)
}
   0xc   :  { %s412_s12 = smov 128   ;;  %s413_s13 = smov 8  }
   0xd   :  { %21 = dma.hbm_to_vmem [thread:$0]  %s442_s0, 1024, %s16_s10, [#allocation4], %s412_s12, %s412_s12, %s413_s13  }
   0xe   :  { %s414_s16 = smov [#allocation6]  }
   0xf   :  { %s27_s17 = sshll.u32 %s414_s16, 4  ;;  %s28_s17 = int_to_ptr.vmem [resolvable:$true] %s27_s17 }
  0x10   :  { %s373_s18 = scalar_lea.vmem %s28_s17, 2048  ;;  %p378_p6 = scmp.lt.s32.totalorder %s28_s17, %s28_s17 }
  0x11   :  { %p374_p5 = scmp.ne.s32.totalorder %s28_s17, %s373_s18  ;;  %p379_p7 = scmp.lt.s32.totalorder %s373_s18, %s373_s18 }
  0x13   :  { %p380_p8 = por %p379_p7, %p378_p6 }
  0x15   :  { %p381_p9 = pnand %p380_p8, %p374_p5 }
  0x17   :  { %384 = shalt.err (!%p381_p9)
}
  0x18   :  { %33 = dma.hbm_to_vmem [thread:$0]  %s443_s1, 2048, %s28_s17, [#allocation7], %s412_s12, %s412_s12, %s413_s13  }
  0x19   :  { %405 = dma.done.wait [#allocation4], 1024  }
  0x1a   :  { %406 = vsyncadd [#allocation4], 4294966272 }
  0x1b   :  { %407 = dma.done.wait [#allocation7], 2048  }
  0x1c   :  { %408 = vsyncadd [#allocation7], 4294965248  ;;  %v87_v0 = vld [vmem:[#allocation6 + $0x70] sm:$0xff]  ;;  %v88_v1 = vld [vmem:[#allocation6 + $0x78] sm:$0xff]  ;;  %s415_s0 = smov [#allocation8]  }
  0x1d   :  { %v85_v2 = vld [vmem:[#allocation6 + $0x60] sm:$0xff]  ;;  %v96_v3 = vpack.c.bf16 %v88_v1, %v87_v0  ;;  %v86_v4 = vld [vmem:[#allocation6 + $0x68] sm:$0xff]  ;;  %v83_v6 = vld [vmem:[#allocation6 + $0x50] sm:$0xff]  ;;  %s234_s1 = sshll.u32 %s415_s0, 4  ;;  %s235_s1 = int_to_ptr.vmem [resolvable:$true] %s234_s1 }
  0x1e   :  { %v95_v5 = vpack.c.bf16 %v86_v4, %v85_v2  ;;  %v84_v7 = vld [vmem:[#allocation6 + $0x58] sm:$0xff]  ;;  %v81_v9 = vld [vmem:[#allocation6 + $0x40] sm:$0xff]  ;;  %v62_v11 = vld [vmem:[#allocation3 + $0x8] sm:$0xff]  ;;  %s385_s21 = scalar_lea.vmem %s235_s1, 512  ;;  %p390_p11 = scmp.lt.s32.totalorder %s235_s1, %s235_s1 }
  0x1f   :  { %298 = vmatprep.subr.bf16.mxu0 %v96_v3  ;;  %322 = vmatprep.subr.bf16.mxu1 %v96_v3  ;;  %v94_v8 = vpack.c.bf16 %v84_v7, %v83_v6  ;;  %v61_v10 = vld [vmem:[#allocation3] sm:$0xff]  ;;  %v82_v12 = vld [vmem:[#allocation6 + $0x48] sm:$0xff]  ;;  %v79_v18 = vld [vmem:[#allocation6 + $0x30] sm:$0xff]  ;;  %p386_p10 = scmp.ne.s32.totalorder %s235_s1, %s385_s21  ;;  %p391_p12 = scmp.lt.s32.totalorder %s385_s21, %s385_s21 }
  0x20   :  { %299 = vmatpush3.bf16.msra.mxu0 %v96_v3  ;;  %330 = vmatpush3.bf16.msra.mxu1 %v96_v3  ;;  %v69_v13 = vpack.c.bf16 %v62_v11, %v61_v10  ;;  %v65_v14 = vld [vmem:[#allocation3 + $0x20] sm:$0xff]  ;;  %v66_v15 = vld [vmem:[#allocation3 + $0x28] sm:$0xff]  ;;  %v93_v17 = vpack.c.bf16 %v82_v12, %v81_v9  ;;  %v80_v19 = vld [vmem:[#allocation6 + $0x38] sm:$0xff] }
  0x21   :  { %300 = vmatprep.subr.bf16.mxu0 %v95_v5  ;;  %323 = vmatprep.subr.bf16.mxu1 %v95_v5  ;;  %v71_v16 = vpack.c.bf16 %v66_v15, %v65_v14  ;;  %v92_v20 = vpack.c.bf16 %v80_v19, %v79_v18  ;;  %v77_v21 = vld [vmem:[#allocation6 + $0x20] sm:$0xff]  ;;  %v78_v22 = vld [vmem:[#allocation6 + $0x28] sm:$0xff]  ;;  %v75_v24 = vld [vmem:[#allocation6 + $0x10] sm:$0xff]  ;;  %p392_p13 = por %p391_p12, %p390_p11 }
  0x22   :  { %314 = vmatprep.mubr.bf16.mxu0 %v69_v13  ;;  %v91_v23 = vpack.c.bf16 %v78_v22, %v77_v21  ;;  %v76_v25 = vld [vmem:[#allocation6 + $0x18] sm:$0xff]  ;;  %v73_v27 = vld [vmem:[#allocation6] sm:$0xff]  ;;  %v74_v28 = vld [vmem:[#allocation6 + $0x8] sm:$0xff] }
  0x23   :  { %318 = vmatprep.mubr.bf16.mxu1 %v71_v16  ;;  %v90_v26 = vpack.c.bf16 %v76_v25, %v75_v24  ;;  %v89_v29 = vpack.c.bf16 %v74_v28, %v73_v27  ;;  %v63_v30 = vld [vmem:[#allocation3 + $0x10] sm:$0xff]  ;;  %v64_v31 = vld [vmem:[#allocation3 + $0x18] sm:$0xff]  ;;  %p393_p0 = pnand %p392_p13, %p386_p10 }
  0x24   :  { %301 = vmatpush3.bf16.msra.mxu0 %v95_v5  ;;  %331 = vmatpush3.bf16.msra.mxu1 %v95_v5  ;;  %v67_v32 = vld [vmem:[#allocation3 + $0x30] sm:$0xff]  ;;  %v68_v33 = vld [vmem:[#allocation3 + $0x38] sm:$0xff]  ;;  %v70_v34 = vpack.c.bf16 %v64_v31, %v63_v30 }
  0x25   :  { %302 = vmatprep.subr.bf16.mxu0 %v94_v8  ;;  %324 = vmatprep.subr.bf16.mxu1 %v94_v8  ;;  %v72_v35 = vpack.c.bf16 %v68_v33, %v67_v32 }
  0x28   :  { %303 = vmatpush3.bf16.msra.mxu0 %v94_v8  ;;  %332 = vmatpush3.bf16.msra.mxu1 %v94_v8 }
  0x29   :  { %304 = vmatprep.subr.bf16.mxu0 %v93_v17  ;;  %325 = vmatprep.subr.bf16.mxu1 %v93_v17 }
  0x2c   :  { %305 = vmatpush3.bf16.msra.mxu0 %v93_v17  ;;  %333 = vmatpush3.bf16.msra.mxu1 %v93_v17 }
  0x2d   :  { %306 = vmatprep.subr.bf16.mxu0 %v92_v20  ;;  %326 = vmatprep.subr.bf16.mxu1 %v92_v20 }
  0x30   :  { %307 = vmatpush3.bf16.msra.mxu0 %v92_v20  ;;  %334 = vmatpush3.bf16.msra.mxu1 %v92_v20 }
  0x31   :  { %308 = vmatprep.subr.bf16.mxu0 %v91_v23  ;;  %327 = vmatprep.subr.bf16.mxu1 %v91_v23 }
  0x34   :  { %309 = vmatpush3.bf16.msra.mxu0 %v91_v23  ;;  %335 = vmatpush3.bf16.msra.mxu1 %v91_v23 }
  0x35   :  { %310 = vmatprep.subr.bf16.mxu0 %v90_v26  ;;  %328 = vmatprep.subr.bf16.mxu1 %v90_v26 }
  0x38   :  { %311 = vmatpush3.bf16.msra.mxu0 %v90_v26  ;;  %336 = vmatpush3.bf16.msra.mxu1 %v90_v26 }
  0x39   :  { %312 = vmatprep.subr.bf16.mxu0 %v89_v29  ;;  %329 = vmatprep.subr.bf16.mxu1 %v89_v29 }
  0x3c   :  { %313 = vmatpush3.bf16.msra.mxu0 %v89_v29  ;;  %337 = vmatpush3.bf16.msra.mxu1 %v89_v29 }
  0x3f   :  { %315 = vmatmul.mubr.bf16.vlgmr.msra.gmra.mxu0 %v70_v34  ;;  %319 = vmatmul.mubr.bf16.vlgmr.msra.gmra.mxu1 %v72_v35 }
  0xff   :  { %v316_v36 = vpop.f32.mrf.mxu0  ;;  %v320_v37 = vpop.f32.mrf.mxu1 }
 0x101   :  { %v131_v38 = vpop.f32.mrf.mxu0  ;;  %v147_v39 = vpop.f32.mrf.mxu1 }
 0x103   :  { %v317_v40 = vpop.f32.mrf.mxu0  ;;  %v321_v41 = vpop.f32.mrf.mxu1 }
 0x104   :  { %v271_v42 = vpack.c.bf16 %v317_v40, %v316_v36  ;;  %v281_v43 = vpack.c.bf16 %v321_v41, %v320_v37 }
 0x105   :  { %v134_v44 = vpop.f32.mrf.mxu0  ;;  %v150_v45 = vpop.f32.mrf.mxu1 }
 0x106   :  { %283 = vst [vmem:[#allocation8 + $0x8] sm:$0xff] %v271_v42   ;;  %285 = vst [vmem:[#allocation8 + $0x18] sm:$0xff] %v281_v43   ;;  %v266_v46 = vpack.c.bf16 %v134_v44, %v131_v38  ;;  %v276_v47 = vpack.c.bf16 %v150_v45, %v147_v39 }
 0x108   :  { %267 = vst [vmem:[#allocation8] sm:$0xff] %v266_v46   ;;  %284 = vst [vmem:[#allocation8 + $0x10] sm:$0xff] %v276_v47  }
 0x109   :  { %396 = shalt.err (!%p393_p0)
}
 0x10a   :  { %s416_s22 = smov 64   ;;  %s417_s23 = smov 4  }
 0x10b   :  { %240 = dma.vmem_to_hbm [thread:$0]  %s235_s1, 512, %s444_s2, [#allocation5], %s416_s22, %s416_s22, %s417_s23  }
 0x10c   :  { %409 = dma.done.wait [#allocation5], 512  }
 0x10d   :  { %410 = vsyncadd [#allocation5], 4294966784 }
 0x10e   :  { %244 = vsyncpa [#allocation4], 1 }
 0x10f   :  { %245 = vsyncpa [#allocation7], 1 }
 0x110   :  { %246 = vsyncpa [#allocation5], 1 }

</bundles_post_ra>
